<compile_context>
chip_gen: v7x
topology: tpu7x:2x2x1
jax: 0.10.0
libtpu: 0.0.40
codegen_flags: <defaults>
</compile_context>

<pallas_src>
import functools

import jax
import jax.numpy as jnp
from jax.experimental import pallas as pl
from jax.experimental.pallas import tpu as pltpu


def _mlp_kernel(*refs, n_layers, classification, precision):
    # refs = (xT_ref, w0, b0, w1, b1, ..., o_ref), all feature-major:
    #   xT_ref: (in_dim, tile)   w_l: (out_l, in_l)   b_l: (out_l, 1)
    xT_ref = refs[0]
    o_ref = refs[-1]
    params = refs[1:-1]

    h = xT_ref[...]                                   # (in_dim, tile)
    for l in range(n_layers):
        w = params[2 * l][...]                        # (out_l, in_l)
        b = params[2 * l + 1][...]                    # (out_l, 1) lane-bcast
        h = jnp.dot(w, h, preferred_element_type=jnp.float32,
                    precision=precision) + b          # (out_l, tile)
        if l < n_layers - 1:
            h = jnp.maximum(h, 0.0)                   # ReLU on dense vregs
    if classification:
        h = jax.nn.sigmoid(h)                         # (out_dim, tile), dense
    o_ref[...] = h.astype(o_ref.dtype)                # lane-dense store


def _round_up(x, m):
    return ((x + m - 1) // m) * m


def _cdiv(a, b):
    return -(-a // b)


def _num_tensorcores():
    """Best-effort TensorCores per chip: v7x/v4/v5p have 2, v5e/v6e have 1."""
    try:
        kind = jax.devices()[0].device_kind.lower()
    except Exception:
        return 1
    if any(tag in kind for tag in ("v7", "v4", "v5p")):
        return 2
    return 1


def _pick_tile(batch, max_tile, num_tc):
    """Lane-axis (batch) tile.

    Either the full batch (a single grid step; full-array blocks are legal at
    any size) or a multiple of 128 (so the lane-tiled x^T / output blocks stay
    aligned and the trailing partial block is clipped by Pallas).
    """
    if num_tc > 1 and batch >= 2 * num_tc * 128:
        # 2*num_tc balanced tiles: each TensorCore gets >=2 grid steps so its
        # DMA prefetch stays pipelined behind compute.
        return min(max_tile, _round_up(_cdiv(batch, 2 * num_tc), 128))
    if batch <= max_tile:
        return batch
    return max_tile


def make_mlp_forward(weights, biases, *, classification, max_tile=32 * 1024,
                     precision=None):
    """Build a pallas_call wrapper for the fused MLP forward.

    weights[l]: (out_l, in_l) float32   (torch Linear.weight orientation)
    biases[l] : (out_l,)      float32

    Returns forward(x, x_transposed=False):
      x: (batch, in_dim)  [or (in_dim, batch) with x_transposed=True]
      -> (batch, out_dim) float32
    """
    n_layers = len(weights)
    in_dim = int(weights[0].shape[1])
    out_dim = int(weights[-1].shape[0])
    max_tile = max(128, _round_up(int(max_tile), 128))

    weights = [jnp.asarray(w, jnp.float32) for w in weights]
    biases_col = [jnp.asarray(b, jnp.float32).reshape(-1, 1) for b in biases]

    flat_params = []
    for w, b in zip(weights, biases_col):
        flat_params.extend([w, b])

    param_bytes = sum(int(p.size) * p.dtype.itemsize for p in flat_params)
    flops_per_col = 2 * sum(int(w.shape[0]) * int(w.shape[1]) for w in weights)

    kernel = functools.partial(_mlp_kernel, n_layers=n_layers,
                               classification=classification,
                               precision=precision)
    num_tc = _num_tensorcores()

    @functools.partial(jax.jit, static_argnames=("x_transposed",))
    def forward(x, x_transposed=False):
        x = jnp.asarray(x, jnp.float32)
        if x_transposed:
            assert x.shape[0] == in_dim, "input feature dim mismatch"
            xT = x
        else:
            assert x.shape[1] == in_dim, "input feature dim mismatch"
            # One extra mem-bound pass over x; pass x already transposed
            # ((in_dim, batch)) to skip it at very large batch.
            xT = x.T
        batch = int(xT.shape[1])

        tile = _pick_tile(batch, max_tile, num_tc)
        grid = (_cdiv(batch, tile),)

        in_specs = [pl.BlockSpec((in_dim, tile), lambda i: (0, i))]
        for w, b in zip(weights, biases_col):
            # Full-array blocks with constant index maps: parameters stay
            # resident in VMEM across every grid step.
            in_specs.append(pl.BlockSpec(w.shape, lambda i: (0, 0)))
            in_specs.append(pl.BlockSpec(b.shape, lambda i: (0, 0)))

        # Actual VMEM footprint: double-buffered x / output tiles + params
        # (+ margin).  A few MiB at most; never the blanket 32 MiB of before.
        tile_bytes = 4 * tile * (in_dim + out_dim)
        vmem_limit = min(32 * 1024 * 1024,
                         max(4 * 1024 * 1024,
                             _round_up(2 * tile_bytes + 2 * param_bytes
                                       + (1 << 20), 1 << 20)))

        cost = pl.CostEstimate(
            flops=batch * flops_per_col,
            transcendentals=(batch * out_dim) if classification else 0,
            bytes_accessed=4 * batch * (in_dim + out_dim) + param_bytes,
        )

        outT = pl.pallas_call(
            kernel,
            out_shape=jax.ShapeDtypeStruct((out_dim, batch), jnp.float32),
            grid_spec=pltpu.PrefetchScalarGridSpec(
                num_scalar_prefetch=0,
                grid=grid,
                in_specs=in_specs,
                out_specs=pl.BlockSpec((out_dim, tile), lambda i: (0, i)),
            ),
            compiler_params=pltpu.CompilerParams(
                dimension_semantics=("parallel",),
                vmem_limit_bytes=vmem_limit,
            ),
            cost_estimate=cost,
        )(xT, *flat_params)

        # (out_dim, batch) -> (batch, out_dim); tiny compared with the x pass.
        return outT.T

    return forward


def init_mlp_params(key, input_dim, hidden_dims, output_dim):
    """Deterministic init mimicking torch.nn.Linear (U[-1/sqrt(fan_in), +]).

    Weights use torch's Linear.weight orientation (out_features, in_features).
    Replicates the torch MLP.__init__ layer-dim chain, including its quirk of
    using hidden_dims[-1] as the final fan-in (consistent when consecutive
    hidden dims match, e.g. [32, 32]).
    """
    dims = [input_dim, hidden_dims[0]]
    for i in range(len(hidden_dims) - 2):
        dims.append(hidden_dims[i + 1])
    dims.append(output_dim)

    weights, biases = [], []
    for l in range(len(dims) - 1):
        fan_in, fan_out = dims[l], dims[l + 1]
        key, kw, kb = jax.random.split(key, 3)
        bound = 1.0 / (fan_in ** 0.5)
        w = jax.random.uniform(kw, (fan_out, fan_in), jnp.float32, -bound, bound)
        b = jax.random.uniform(kb, (fan_out,), jnp.float32, -bound, bound)
        weights.append(w)
        biases.append(b)
    return weights, biases


def reference_forward(x, weights, biases, classification):
    h = jnp.asarray(x, jnp.float32)
    n = len(weights)
    for l, (w, b) in enumerate(zip(weights, biases)):
        h = h @ w.T + b                       # torch Linear: x @ W^T + b
        if l < n - 1:
            h = jnp.maximum(h, 0.0)
    return jax.nn.sigmoid(h) if classification else h


if __name__ == "__main__":
    # Config consistent with MLP(input_dim=16, hidden_dims=[32, 32],
    # model_type="classification") -> output_dim = 2, final Sigmoid.
    input_dim = 16
    hidden_dims = [32, 32]
    model_type = "classification"
    output_dim = 1 if model_type == "regression" else 2
    classification = model_type == "classification"

    key = jax.random.PRNGKey(0)
    key, kx = jax.random.split(key)
    weights, biases = init_mlp_params(key, input_dim, hidden_dims, output_dim)

    mlp_forward = make_mlp_forward(weights, biases, classification=classification)

    # Small batch: a single full-array block, one grid step.
    batch = 16
    x = jax.random.normal(kx, (batch, input_dim), jnp.float32)
    y = jax.block_until_ready(mlp_forward(x))
    y_ref = reference_forward(x, weights, biases, classification)
    assert y.shape == (batch, output_dim)
    assert jnp.allclose(y, y_ref, atol=1e-5, rtol=1e-5), "mismatch vs reference"

    # Odd batch (not a multiple of 8/128): still one full-array block, no pad.
    x_odd = jax.random.normal(jax.random.PRNGKey(1), (37, input_dim), jnp.float32)
    y_odd = jax.block_until_ready(mlp_forward(x_odd))
    y_odd_ref = reference_forward(x_odd, weights, biases, classification)
    assert y_odd.shape == (37, output_dim)
    assert jnp.allclose(y_odd, y_odd_ref, atol=1e-5, rtol=1e-5), "mismatch (odd batch)"

    # Multi-step grid with a clipped partial last block (no wrapper padding).
    small_tile_forward = make_mlp_forward(
        weights, biases, classification=classification, max_tile=128)
    x_big = jax.random.normal(jax.random.PRNGKey(2), (300, input_dim), jnp.float32)
    y_big = jax.block_until_ready(small_tile_forward(x_big))
    y_big_ref = reference_forward(x_big, weights, biases, classification)
    assert y_big.shape == (300, output_dim)
    assert jnp.allclose(y_big, y_big_ref, atol=1e-5, rtol=1e-5), "mismatch (partial block)"

    # Pre-transposed input path (skips the wrapper transpose of x).
    y_t = jax.block_until_ready(mlp_forward(x.T, x_transposed=True))
    assert jnp.allclose(y_t, y_ref, atol=1e-5, rtol=1e-5), "mismatch (x_transposed)"

    print("KERNEL_OK")
</pallas_src>

<mosaic_0001>
module attributes {stable_mosaic.version = 11 : i64} {
  func.func @_mlp_kernel(%arg0: i32, %arg1: memref<16x16xf32, #tpu.memory_space<vmem>>, %arg2: memref<32x16xf32, #tpu.memory_space<vmem>>, %arg3: memref<32x1xf32, #tpu.memory_space<vmem>>, %arg4: memref<2x32xf32, #tpu.memory_space<vmem>>, %arg5: memref<2x1xf32, #tpu.memory_space<vmem>>, %arg6: memref<2x16xf32, #tpu.memory_space<vmem>>) attributes {dimension_semantics = [#tpu.dimension_semantics<parallel>], iteration_bounds = array<i64: 1>, scalar_prefetch = 0 : i64, scratch_operands = 0 : i64, tpu.core_type = #tpu.core_type<tc>, window_params = [{transform_indices = @transform_0, window_bounds = array<i64: 16, 16>}, {pipeline_mode = #tpu.pipeline_mode<synchronous>, transform_indices = @transform_1, window_bounds = array<i64: 32, 16>}, {pipeline_mode = #tpu.pipeline_mode<synchronous>, transform_indices = @transform_2, window_bounds = array<i64: 32, 1>}, {pipeline_mode = #tpu.pipeline_mode<synchronous>, transform_indices = @transform_3, window_bounds = array<i64: 2, 32>}, {pipeline_mode = #tpu.pipeline_mode<synchronous>, transform_indices = @transform_4, window_bounds = array<i64: 2, 1>}, {transform_indices = @transform_5, window_bounds = array<i64: 2, 16>}]} {
    %c0 = arith.constant 0 : index
    %c0_0 = arith.constant 0 : index
    %0 = vector.load %arg1[%c0, %c0_0] : memref<16x16xf32, #tpu.memory_space<vmem>>, vector<16x16xf32>
    %c0_1 = arith.constant 0 : index
    %c0_2 = arith.constant 0 : index
    %1 = vector.load %arg2[%c0_1, %c0_2] : memref<32x16xf32, #tpu.memory_space<vmem>>, vector<32x16xf32>
    %c0_3 = arith.constant 0 : index
    %c0_4 = arith.constant 0 : index
    %2 = vector.load %arg3[%c0_3, %c0_4] : memref<32x1xf32, #tpu.memory_space<vmem>>, vector<32x1xf32>
    %cst = arith.constant dense<0.000000e+00> : vector<32x16xf32>
    %3 = tpu.matmul %1, %0, %cst {dimension_numbers = #tpu.dot_dimension_numbers<[1], [0], [0], [1], [0, 0, 1, 1], [], []>} : vector<32x16xf32>, vector<16x16xf32>, vector<32x16xf32> -> vector<32x16xf32>
    %4 = vector.broadcast %2 : vector<32x1xf32> to vector<32x16xf32>
    %5 = arith.addf %3, %4 : vector<32x16xf32>
    %cst_5 = arith.constant 0.000000e+00 : f32
    %6 = vector.broadcast %cst_5 : f32 to vector<32x16xf32>
    %7 = arith.maximumf %5, %6 : vector<32x16xf32>
    %c0_6 = arith.constant 0 : index
    %c0_7 = arith.constant 0 : index
    %8 = vector.load %arg4[%c0_6, %c0_7] : memref<2x32xf32, #tpu.memory_space<vmem>>, vector<2x32xf32>
    %c0_8 = arith.constant 0 : index
    %c0_9 = arith.constant 0 : index
    %9 = vector.load %arg5[%c0_8, %c0_9] : memref<2x1xf32, #tpu.memory_space<vmem>>, vector<2x1xf32>
    %cst_10 = arith.constant dense<0.000000e+00> : vector<2x16xf32>
    %10 = tpu.matmul %8, %7, %cst_10 {dimension_numbers = #tpu.dot_dimension_numbers<[1], [0], [0], [1], [0, 0, 1, 1], [], []>} : vector<2x32xf32>, vector<32x16xf32>, vector<2x16xf32> -> vector<2x16xf32>
    %11 = vector.broadcast %9 : vector<2x1xf32> to vector<2x16xf32>
    %12 = arith.addf %10, %11 : vector<2x16xf32>
    %13 = arith.negf %12 : vector<2x16xf32>
    %14 = math.exp %13 : vector<2x16xf32>
    %cst_11 = arith.constant 1.000000e+00 : f32
    %15 = vector.broadcast %cst_11 : f32 to vector<2x16xf32>
    %16 = arith.addf %15, %14 : vector<2x16xf32>
    %17 = arith.divf %15, %16 : vector<2x16xf32>
    %c0_12 = arith.constant 0 : index
    %c0_13 = arith.constant 0 : index
    %18 = vector.load %arg6[%c0_12, %c0_13] : memref<2x16xf32, #tpu.memory_space<vmem>>, vector<2x16xf32>
    tpu.vector_store %arg6[%c0_12, %c0_13], %17 {strides = array<i32>} : memref<2x16xf32, #tpu.memory_space<vmem>>, vector<2x16xf32>,
    return
  }
  func.func @transform_0(%arg0: i32) -> (i32, i32) {
    %c0_i32 = arith.constant 0 : i32
    %c0_i32_0 = arith.constant 0 : i32
    return %c0_i32, %arg0 : i32, i32
  }
  func.func @transform_1(%arg0: i32) -> (i32, i32) {
    %c0_i32 = arith.constant 0 : i32
    %c0_i32_0 = arith.constant 0 : i32
    %c0_i32_1 = arith.constant 0 : i32
    return %c0_i32, %c0_i32_0 : i32, i32
  }
  func.func @transform_2(%arg0: i32) -> (i32, i32) {
    %c0_i32 = arith.constant 0 : i32
    %c0_i32_0 = arith.constant 0 : i32
    %c0_i32_1 = arith.constant 0 : i32
    return %c0_i32, %c0_i32_0 : i32, i32
  }
  func.func @transform_3(%arg0: i32) -> (i32, i32) {
    %c0_i32 = arith.constant 0 : i32
    %c0_i32_0 = arith.constant 0 : i32
    %c0_i32_1 = arith.constant 0 : i32
    return %c0_i32, %c0_i32_0 : i32, i32
  }
  func.func @transform_4(%arg0: i32) -> (i32, i32) {
    %c0_i32 = arith.constant 0 : i32
    %c0_i32_0 = arith.constant 0 : i32
    %c0_i32_1 = arith.constant 0 : i32
    return %c0_i32, %c0_i32_0 : i32, i32
  }
  func.func @transform_5(%arg0: i32) -> (i32, i32) {
    %c0_i32 = arith.constant 0 : i32
    %c0_i32_0 = arith.constant 0 : i32
    return %c0_i32, %arg0 : i32, i32
  }
}

</mosaic_0001>

<bundles_post_ra>
// kernel: forward.1
= control target key start
LH: loop header
LB: loop body
LE: loop exit
PB: predicated region body
PF: predicated region fallthrough
CT: control target
= control target key end

     0   :  { %10 = vsyncpa [#allocation3], 0  ;;  %s471_s0 = inlined_call_operand.vmem [shape: f32[16,16], index: 0, kind: input, shape index: {}]   ;;  %s472_s1 = inlined_call_operand.hbm [shape: f32[32,16], index: 1, kind: input, shape index: {}]   ;;  %s473_s2 = inlined_call_operand.vmem [shape: f32[32,1], index: 2, kind: input, shape index: {}]   ;;  %s474_s3 = inlined_call_operand.vmem [shape: f32[2,32], index: 3, kind: input, shape index: {}]   ;;  %s475_s4 = inlined_call_operand.vmem [shape: f32[2,1], index: 4, kind: input, shape index: {}]   ;;  %s476_s5 = inlined_call_operand.hbm [shape: f32[2,16], index: 5, kind: output, shape index: {}]  }
   0x1   :  { %11 = vsyncpa [#allocation4], 0  ;;  %s381_s18 = smov [#allocation2]   ;;  %s333_s22 = scalar_lea.hbm %s472_s1, 512 }
   0x2   :  { %s19_s19 = sshll.u32 %s381_s18, 4  ;;  %p334_p0 = scmp.ne.s32.totalorder %s472_s1, %s333_s22  ;;  %s20_s19 = int_to_ptr.vmem [resolvable:$true] %s19_s19 }
   0x3   :  { %p337_p1 = scmp.lt.u32.totalorder %s333_s22, %s472_s1 }
   0x5   :  { %p339_p2 = pnand %p337_p1, %p334_p0 }
   0x7   :  { %342 = shalt.err (!%p339_p2)
}
   0x8   :  { %s343_s27 = scalar_lea.vmem %s20_s19, 512  ;;  %p348_p4 = scmp.lt.s32.totalorder %s20_s19, %s20_s19 }
   0x9   :  { %p344_p3 = scmp.ne.s32.totalorder %s20_s19, %s343_s27  ;;  %p349_p5 = scmp.lt.s32.totalorder %s343_s27, %s343_s27 }
   0xb   :  { %p350_p6 = por %p349_p5, %p348_p4 }
   0xd   :  { %p351_p7 = pnand %p350_p6, %p344_p3 }
   0xf   :  { %354 = shalt.err (!%p351_p7)
}
  0x10   :  { %s382_s28 = smov 128   ;;  %s383_s29 = smov 8  }
  0x11   :  { %25 = dma.hbm_to_vmem [thread:$0]  %s472_s1, 512, %s20_s19, [#allocation3], %s382_s28, %s382_s28, %s383_s29  }
  0x12   :  { %377 = dma.done.wait [#allocation3], 512  }
  0x13   :  { %378 = vsyncadd [#allocation3], 4294966784  ;;  %v384_v0 = vmov 0   ;;  %vm65_vm0 = vcmask 130048   ;;  %v35_v1 = vld [vmem:[%s471_s0] sm:$0xff]  ;;  %v36_v2 = vld [vmem:[%s471_s0 + $0x8] sm:$0xff] }
  0x14   :  { %327 = vset.pattern.permute.xlu0 %v384_v0  ;;  %328 = vset.pattern.permute.xlu1 %v384_v0  ;;  %v37_v3 = vld [vmem:[#allocation2] sm:$0xff]  ;;  %v309_v4 = vpack.c.bf16 %v36_v2, %v35_v1  ;;  %v41_v5 = vld [vmem:[%s473_s2] sm:$0xff]  ;;  %v38_v7 = vld [vmem:[#allocation2 + $0x8] sm:$0xff]  ;;  %v385_v13 = vmov 0.0|0.0   ;;  %vm386_vm1 = vmmov 0   ;;  %v387_v14 = vmov 0.0  }
  0x15   :  { %292 = vmatprep.mubr.msk.f32.mxu0 %vm65_vm0, %v37_v3  ;;  %v43_v6 = vld [vmem:[%s473_s2 + $0x10] sm:$0xff]  ;;  %47 = vperm.xlu0 %327, %v41_v5   ;;  %v42_v8 = vld [vmem:[%s473_s2 + $0x8] sm:$0xff]  ;;  %v39_v9 = vld [vmem:[#allocation2 + $0x10] sm:$0xff]  ;;  %vm174_vm2 = vcmask 261120   ;;  %s388_s19 = smov [#allocation5]   ;;  %vm254_vm3 = vcmask 123904  }
  0x16   :  { %310 = vmatprep.subr.bf16.mxu0 %v309_v4  ;;  %57 = vperm.xlu1 %328, %v43_v6   ;;  %v44_v10 = vld [vmem:[%s473_s2 + $0x18] sm:$0xff]  ;;  %v40_v11 = vld [vmem:[#allocation2 + $0x18] sm:$0xff]  ;;  %v168_v12 = vld [vmem:[%s475_s4] sm:$0x3]  ;;  %s262_s20 = sshll.u32 %s388_s19, 4  ;;  %s263_s20 = int_to_ptr.vmem [resolvable:$true] %s262_s20 }
  0x17   :  { %312 = vmatpush3.bf16.msra.mxu0 %v309_v4  ;;  %313 = vmatprep.subr.bf16.mxu1 %v385_v13  ;;  %v167_v33 = vld [vmem:[%s474_s3] sm:$0x3]  ;;  %s355_s21 = scalar_lea.vmem %s263_s20, 32  ;;  %p360_p9 = scmp.lt.s32.totalorder %s263_s20, %s263_s20 }
  0x18   :  { %306 = vmatprep.mubr.msk.f32.mxu1 %vm386_vm1, %v387_v14  ;;  %p356_p8 = scmp.ne.s32.totalorder %s263_s20, %s355_s21  ;;  %p361_p10 = scmp.lt.s32.totalorder %s355_s21, %s355_s21 }
  0x19   :  { %52 = vperm.xlu0 %327, %v42_v8  }
  0x1a   :  { %293 = vmatmul.mubr.msk.f32.vlgmr.msra.gmra.mrb[0].mxu0 %vm65_vm0, %v38_v7  ;;  %62 = vperm.xlu1 %328, %v44_v10   ;;  %p362_p11 = por %p361_p10, %p360_p9 }
  0x1b   :  { %295 = vmatprep.mubr.msk.f32.mxu0 %vm65_vm0, %v39_v9 }
  0x1c   :  { %p363_p12 = pnand %p362_p11, %p356_p8 }
  0x1d   :  { %171 = vperm.xlu0 %327, %v168_v12  }
  0x1e   :  { %296 = vmatmul.mubr.msk.f32.gmra.mrb[2].mxu0 %vm65_vm0, %v40_v11 }
  0x94   :  { %v48_v15 = vpop.permute.xlu0 %47 }
  0x95   :  { %v58_v16 = vpop.permute.xlu1 %57 }
  0x98   :  { %v53_v17 = vpop.permute.xlu0 %52 }
  0x99   :  { %v63_v23 = vpop.permute.xlu1 %62 }
  0x9c   :  { %v172_v34 = vpop.permute.xlu0 %171 }
  0xed   :  { %v294_v18 = vpop.f32.mrb[0].mxu0 }
  0xee   :  { %v150_v19 = vadd.f32 %v294_v18, %v53_v17  ;;  %v144_v20 = vpop.f32.mrb[1].mxu0 }
  0xef   :  { %v145_v21 = vadd.f32 %v144_v20, %v48_v15 }
  0xf0   :  { %v164_v22 = vmax.f32 %v150_v19, 0.0 }
  0xf1   :  { %v163_v24 = vmax.f32 %v145_v21, 0.0  ;;  %v297_v25 = vpop.f32.mrb[2].mxu0 }
  0xf2   :  { %v160_v26 = vadd.f32 %v297_v25, %v63_v23  ;;  %v154_v27 = vpop.f32.mrb[3].mxu0 }
  0xf3   :  { %v155_v28 = vadd.f32 %v154_v27, %v58_v16  ;;  %v314_v29 = vpack.c.bf16 %v164_v22, %v163_v24 }
  0xf4   :  { %v166_v30 = vmax.f32 %v160_v26, 0.0 }
  0xf5   :  { %v165_v31 = vmax.f32 %v155_v28, 0.0  ;;  %315 = vmatpush3.bf16.msra.mxu1 %v314_v29 }
  0xf6   :  { %316 = vmatprep.subr.bf16.mxu1 %v385_v13 }
  0xf7   :  { %v317_v32 = vpack.c.bf16 %v166_v30, %v165_v31 }
  0xf9   :  { %318 = vmatpush3.bf16.msra.mxu1 %v317_v32 }
  0xfc   :  { %307 = vmatmul.mubr.msk.f32.vlgmr.msra.gmra.mrb[0].mxu1 %vm174_vm2, %v167_v33 }
 0x1cf   :  { %v244_v35 = vpop.f32.mrb[0].mxu1 }
 0x1d0   :  { %v245_v36 = vadd.f32 %v244_v35, %v172_v34  ;;  %v308_v37 = vpop.f32.mrb[1].mxu1 }
 0x1d2   :  { %v276_v38 = vmul.f32 -1.442695, %v245_v36 }
 0x1d4   :  { %329 = vpow2.f32 %v276_v38 }
 0x1de   :  { %v330_v39 = vpop.eup %329 }
 0x1df   :  { %v251_v40 = vadd.f32 1.0, %v330_v39 }
 0x1e1   :  { %331 = vrcp.f32 %v251_v40 }
 0x1eb   :  { %v332_v41 = vpop.eup %331 }
 0x1ec   :  { %255 = vst.msk [vmem:[#allocation5] sm:$0x3] %vm254_vm3, %v332_v41 }
 0x1ed   :  { %366 = shalt.err (!%p363_p12)
}
 0x1ee   :  { %s367_s23 = scalar_lea.hbm %s476_s5, 32 }
 0x1ef   :  { %p368_p13 = scmp.ne.s32.totalorder %s476_s5, %s367_s23  ;;  %p371_p0 = scmp.lt.u32.totalorder %s367_s23, %s476_s5 }
 0x1f1   :  { %p373_p1 = pnand %p371_p0, %p368_p13 }
 0x1f3   :  { %376 = shalt.err (!%p373_p1)
}
 0x1f4   :  { %265 = dma.vmem_to_hbm [thread:$0]  %s263_s20, 32, %s476_s5, [#allocation4]  }
 0x1f5   :  { %379 = dma.done.wait [#allocation4], 32  }
 0x1f6   :  { %380 = vsyncadd [#allocation4], 4294967264 }
 0x1f7   :  { %269 = vsyncpa [#allocation3], 1 }
 0x1f8   :  { %270 = vsyncpa [#allocation4], 1 }

</bundles_post_ra>
